<compile_context>
chip_gen: v6e
topology: v6e:2x2x1
jax: 0.10.0
libtpu: 0.0.40
codegen_flags: <defaults>
</compile_context>

<pallas_src>
import numpy as np
import jax
import jax.numpy as jnp
from jax.experimental import pallas as pl
from jax.experimental.pallas import tpu as pltpu

CIN_PAD = 8  # channels padded to one full sublane group per image


def _pick_images_per_block(n, bytes_per_image, vmem_budget=8 << 20, max_unroll=8):
    """Images per grid block: grid of 1 on single-TC chips, >=2 blocks on v7x."""
    try:
        kind = jax.devices()[0].device_kind.lower()
    except Exception:  # pragma: no cover - defensive
        kind = ""
    dual_tc = "v7" in kind
    cap = min(n, max_unroll, max(1, vmem_budget // max(bytes_per_image, 1)))
    if dual_tc and n % 2 == 0:
        cap = min(cap, n // 2)        # keep >= 2 "parallel" blocks for the 2 TCs
    nb = max(1, cap)
    while n % nb:                     # keep the grid exact
        nb -= 1
    return max(nb, 1)


def _make_conv_kernel(nb, kh_sz, kw_sz, w_img, lp_pad):
    def kernel(x_ref, w_ref, o_ref, patches_ref):
        # x_ref:       (nb*8, Lx)        row-flattened, zero/ones-padded images
        # w_ref:       (Cout, K_pad)     weights (bias folded into column 7)
        # o_ref:       (Cout, nb*Lp_pad) lane-dense output slab
        # patches_ref: (K_pad, nb*Lp_pad) batched im2col scratch
        #
        # Build the batched im2col matrix: one fully aligned, unmasked
        # (8, Lp_pad) copy per (image, tap).  The padded channel rows carry the
        # wrapper's zeros / ones, so no in-kernel scratch init is needed.
        for i in range(nb):
            r_img = i * CIN_PAD
            c_img = i * lp_pad
            for kh in range(kh_sz):
                for kw in range(kw_sz):
                    t = kh * kw_sz + kw
                    off = kh * w_img + kw
                    patches_ref[t * CIN_PAD:(t + 1) * CIN_PAD,
                                c_img:c_img + lp_pad] = (
                        x_ref[r_img:r_img + CIN_PAD, off:off + lp_pad])
        # Single MXU contraction for the whole block (bias already folded in);
        # one lane-dense multiple-of-128 store.
        o_ref[...] = jnp.dot(
            w_ref[...], patches_ref[...],
            preferred_element_type=jnp.float32).astype(o_ref.dtype)

    return kernel


def conv2d_3x3_pallas(x, w, b, images_per_block=None):
    """Valid KHxKW conv, stride 1, no padding, NCHW / OIHW, as one MXU matmul."""
    N, Cin, H, W = x.shape
    Cout, Cin_w, KH, KW = w.shape
    assert Cin == Cin_w and Cin < CIN_PAD
    Ho, Wo = H - KH + 1, W - KW + 1

    n_taps = KH * KW
    K_pad = n_taps * CIN_PAD                       # 72 for a 3x3x3 conv
    Lp = Ho * W                                    # valid lanes (row pitch = W)
    Lp_pad = pl.cdiv(Lp, 128) * 128                # lane-dense output width
    max_off = (KH - 1) * W + (KW - 1)
    # Every tap reads a full Lp_pad-wide window starting at `off`; make the flat
    # image long enough (and zero padded) for the largest window.
    Lx = pl.cdiv(max(H * W, max_off + Lp_pad), 128) * 128

    itemsize = 4
    bytes_per_image = itemsize * (2 * CIN_PAD * Lx          # double-buffered in
                                  + 2 * Cout * Lp_pad       # double-buffered out
                                  + K_pad * Lp_pad)         # im2col scratch
    nb = images_per_block or _pick_images_per_block(N, bytes_per_image)
    assert N % nb == 0, (N, nb)
    grid = (N // nb,)

    # ---- wrapper-side layout plumbing (free, runs as plain XLA) ------------
    # Input: (N*8, Lx).  Rows [i*8, i*8+Cin) hold image i's channels, row
    # i*8+7 is all-ones (bias fold), the rest are zeros.
    x_flat = x.reshape(N, Cin, H * W).astype(jnp.float32)
    x_pad = jnp.zeros((N, CIN_PAD, Lx), jnp.float32)
    x_pad = x_pad.at[:, :Cin, :H * W].set(x_flat)
    x_pad = x_pad.at[:, CIN_PAD - 1, :].set(1.0)
    x_pad = x_pad.reshape(N * CIN_PAD, Lx)

    # Weights: (Cout, K_pad) with column t*8+c = w[:, c, kh, kw] (t = kh*KW+kw),
    # column 7 of tap 0 = bias, all other padded columns = 0.
    w_t = jnp.transpose(w, (0, 2, 3, 1)).astype(jnp.float32)   # (Cout,KH,KW,Cin)
    w_t = w_t.reshape(Cout, n_taps, Cin)
    w2d = jnp.zeros((Cout, n_taps, CIN_PAD), jnp.float32)
    w2d = w2d.at[:, :, :Cin].set(w_t)
    w2d = w2d.at[:, 0, CIN_PAD - 1].set(b.astype(jnp.float32))
    w2d = w2d.reshape(Cout, K_pad)

    kernel = _make_conv_kernel(nb, KH, KW, W, Lp_pad)

    out_slab = pl.pallas_call(
        kernel,
        out_shape=jax.ShapeDtypeStruct((Cout, N * Lp_pad), jnp.float32),
        grid=grid,
        in_specs=[
            pl.BlockSpec((nb * CIN_PAD, Lx), lambda n: (n, 0)),
            pl.BlockSpec((Cout, K_pad), lambda n: (0, 0)),
        ],
        out_specs=pl.BlockSpec((Cout, nb * Lp_pad), lambda n: (0, n)),
        scratch_shapes=[pltpu.VMEM((K_pad, nb * Lp_pad), jnp.float32)],
        compiler_params=pltpu.CompilerParams(
            dimension_semantics=("parallel",)),
        cost_estimate=pl.CostEstimate(
            flops=2 * N * Cout * K_pad * Lp_pad,
            transcendentals=0,
            bytes_accessed=itemsize * (N * CIN_PAD * Lx
                                       + Cout * K_pad
                                       + Cout * N * Lp_pad)),
    )(x_pad, w2d)

    # Free layout plumbing: drop per-image lane padding and the (W - Wo)
    # garbage columns of each output row, then move batch to the front.
    out = out_slab.reshape(Cout, N, Lp_pad)[:, :, :Lp]
    out = out.reshape(Cout, N, Ho, W)[..., :Wo]
    return jnp.transpose(out, (1, 0, 2, 3)).astype(x.dtype)


def example_backbone_forward(x, params):
    """Mirrors ExampleBackbone.forward: returns a list with one tensor."""
    w, b = params
    return [conv2d_3x3_pallas(x, w, b)]


if __name__ == "__main__":
    key = jax.random.PRNGKey(0)
    k_x, k_w, k_b = jax.random.split(key, 3)

    # nn.Conv2d(3, 3, 3): weight (3, 3, 3, 3), bias (3,)
    N, Cin, H, W = 2, 3, 16, 16
    Cout, KH, KW = 3, 3, 3

    x = jax.random.normal(k_x, (N, Cin, H, W), dtype=jnp.float32)
    # Deterministic synthetic init (PyTorch-like uniform fan_in scaling).
    fan_in = Cin * KH * KW
    bound = 1.0 / np.sqrt(fan_in)
    w = jax.random.uniform(k_w, (Cout, Cin, KH, KW), jnp.float32, -bound, bound)
    b = jax.random.uniform(k_b, (Cout,), jnp.float32, -bound, bound)

    outs = example_backbone_forward(x, (w, b))
    out = jax.block_until_ready(outs[0])

    # Reference valid conv in float64 numpy (NCHW / OIHW).
    Ho, Wo = H - KH + 1, W - KW + 1
    xn = np.asarray(x, np.float64)
    wn = np.asarray(w, np.float64)
    bn = np.asarray(b, np.float64)
    ref = np.zeros((N, Cout, Ho, Wo), np.float64)
    for kh in range(KH):
        for kw in range(KW):
            ref += np.einsum("ncij,oc->noij",
                             xn[:, :, kh:kh + Ho, kw:kw + Wo], wn[:, :, kh, kw])
    ref += bn.reshape(1, Cout, 1, 1)

    assert out.shape == (N, Cout, Ho, Wo), out.shape
    assert np.allclose(np.asarray(out, np.float64), ref, atol=1e-4, rtol=1e-4)

    print("KERNEL_OK")
</pallas_src>

<mosaic_0001>
module attributes {stable_mosaic.version = 11 : i64} {
  func.func @kernel(%arg0: i32, %arg1: memref<16x384xf32, #tpu.memory_space<vmem>>, %arg2: memref<3x72xf32, #tpu.memory_space<vmem>>, %arg3: memref<3x512xf32, #tpu.memory_space<vmem>>, %arg4: memref<72x512xf32, #tpu.memory_space<vmem>>) attributes {dimension_semantics = [#tpu.dimension_semantics<parallel>], iteration_bounds = array<i64: 1>, scalar_prefetch = 0 : i64, scratch_operands = 1 : i64, tpu.core_type = #tpu.core_type<tc>, window_params = [{transform_indices = @transform_0, window_bounds = array<i64: 16, 384>}, {pipeline_mode = #tpu.pipeline_mode<synchronous>, transform_indices = @transform_1, window_bounds = array<i64: 3, 72>}, {transform_indices = @transform_2, window_bounds = array<i64: 3, 512>}]} {
    %c0 = arith.constant 0 : index
    %c0_0 = arith.constant 0 : index
    %0 = vector.load %arg1[%c0, %c0_0] : memref<16x384xf32, #tpu.memory_space<vmem>>, vector<8x256xf32>
    %c0_1 = arith.constant 0 : index
    %c0_2 = arith.constant 0 : index
    %1 = vector.load %arg4[%c0_1, %c0_2] : memref<72x512xf32, #tpu.memory_space<vmem>>, vector<8x256xf32>
    tpu.vector_store %arg4[%c0_1, %c0_2], %0 {strides = array<i32>} : memref<72x512xf32, #tpu.memory_space<vmem>>, vector<8x256xf32>,
    %c0_3 = arith.constant 0 : index
    %c1 = arith.constant 1 : index
    %2 = vector.load %arg1[%c0_3, %c1] : memref<16x384xf32, #tpu.memory_space<vmem>>, vector<8x256xf32>
    %c8 = arith.constant 8 : index
    %c0_4 = arith.constant 0 : index
    %3 = vector.load %arg4[%c8, %c0_4] : memref<72x512xf32, #tpu.memory_space<vmem>>, vector<8x256xf32>
    tpu.vector_store %arg4[%c8, %c0_4], %2 {strides = array<i32>} : memref<72x512xf32, #tpu.memory_space<vmem>>, vector<8x256xf32>,
    %c0_5 = arith.constant 0 : index
    %c2 = arith.constant 2 : index
    %4 = vector.load %arg1[%c0_5, %c2] : memref<16x384xf32, #tpu.memory_space<vmem>>, vector<8x256xf32>
    %c16 = arith.constant 16 : index
    %c0_6 = arith.constant 0 : index
    %5 = vector.load %arg4[%c16, %c0_6] : memref<72x512xf32, #tpu.memory_space<vmem>>, vector<8x256xf32>
    tpu.vector_store %arg4[%c16, %c0_6], %4 {strides = array<i32>} : memref<72x512xf32, #tpu.memory_space<vmem>>, vector<8x256xf32>,
    %c0_7 = arith.constant 0 : index
    %c16_8 = arith.constant 16 : index
    %6 = vector.load %arg1[%c0_7, %c16_8] : memref<16x384xf32, #tpu.memory_space<vmem>>, vector<8x256xf32>
    %c24 = arith.constant 24 : index
    %c0_9 = arith.constant 0 : index
    %7 = vector.load %arg4[%c24, %c0_9] : memref<72x512xf32, #tpu.memory_space<vmem>>, vector<8x256xf32>
    tpu.vector_store %arg4[%c24, %c0_9], %6 {strides = array<i32>} : memref<72x512xf32, #tpu.memory_space<vmem>>, vector<8x256xf32>,
    %c0_10 = arith.constant 0 : index
    %c17 = arith.constant 17 : index
    %8 = vector.load %arg1[%c0_10, %c17] : memref<16x384xf32, #tpu.memory_space<vmem>>, vector<8x256xf32>
    %c32 = arith.constant 32 : index
    %c0_11 = arith.constant 0 : index
    %9 = vector.load %arg4[%c32, %c0_11] : memref<72x512xf32, #tpu.memory_space<vmem>>, vector<8x256xf32>
    tpu.vector_store %arg4[%c32, %c0_11], %8 {strides = array<i32>} : memref<72x512xf32, #tpu.memory_space<vmem>>, vector<8x256xf32>,
    %c0_12 = arith.constant 0 : index
    %c18 = arith.constant 18 : index
    %10 = vector.load %arg1[%c0_12, %c18] : memref<16x384xf32, #tpu.memory_space<vmem>>, vector<8x256xf32>
    %c40 = arith.constant 40 : index
    %c0_13 = arith.constant 0 : index
    %11 = vector.load %arg4[%c40, %c0_13] : memref<72x512xf32, #tpu.memory_space<vmem>>, vector<8x256xf32>
    tpu.vector_store %arg4[%c40, %c0_13], %10 {strides = array<i32>} : memref<72x512xf32, #tpu.memory_space<vmem>>, vector<8x256xf32>,
    %c0_14 = arith.constant 0 : index
    %c32_15 = arith.constant 32 : index
    %12 = vector.load %arg1[%c0_14, %c32_15] : memref<16x384xf32, #tpu.memory_space<vmem>>, vector<8x256xf32>
    %c48 = arith.constant 48 : index
    %c0_16 = arith.constant 0 : index
    %13 = vector.load %arg4[%c48, %c0_16] : memref<72x512xf32, #tpu.memory_space<vmem>>, vector<8x256xf32>
    tpu.vector_store %arg4[%c48, %c0_16], %12 {strides = array<i32>} : memref<72x512xf32, #tpu.memory_space<vmem>>, vector<8x256xf32>,
    %c0_17 = arith.constant 0 : index
    %c33 = arith.constant 33 : index
    %14 = vector.load %arg1[%c0_17, %c33] : memref<16x384xf32, #tpu.memory_space<vmem>>, vector<8x256xf32>
    %c56 = arith.constant 56 : index
    %c0_18 = arith.constant 0 : index
    %15 = vector.load %arg4[%c56, %c0_18] : memref<72x512xf32, #tpu.memory_space<vmem>>, vector<8x256xf32>
    tpu.vector_store %arg4[%c56, %c0_18], %14 {strides = array<i32>} : memref<72x512xf32, #tpu.memory_space<vmem>>, vector<8x256xf32>,
    %c0_19 = arith.constant 0 : index
    %c34 = arith.constant 34 : index
    %16 = vector.load %arg1[%c0_19, %c34] : memref<16x384xf32, #tpu.memory_space<vmem>>, vector<8x256xf32>
    %c64 = arith.constant 64 : index
    %c0_20 = arith.constant 0 : index
    %17 = vector.load %arg4[%c64, %c0_20] : memref<72x512xf32, #tpu.memory_space<vmem>>, vector<8x256xf32>
    tpu.vector_store %arg4[%c64, %c0_20], %16 {strides = array<i32>} : memref<72x512xf32, #tpu.memory_space<vmem>>, vector<8x256xf32>,
    %c8_21 = arith.constant 8 : index
    %c0_22 = arith.constant 0 : index
    %18 = vector.load %arg1[%c8_21, %c0_22] : memref<16x384xf32, #tpu.memory_space<vmem>>, vector<8x256xf32>
    %c0_23 = arith.constant 0 : index
    %c256 = arith.constant 256 : index
    %19 = vector.load %arg4[%c0_23, %c256] : memref<72x512xf32, #tpu.memory_space<vmem>>, vector<8x256xf32>
    tpu.vector_store %arg4[%c0_23, %c256], %18 {strides = array<i32>} : memref<72x512xf32, #tpu.memory_space<vmem>>, vector<8x256xf32>,
    %c8_24 = arith.constant 8 : index
    %c1_25 = arith.constant 1 : index
    %20 = vector.load %arg1[%c8_24, %c1_25] : memref<16x384xf32, #tpu.memory_space<vmem>>, vector<8x256xf32>
    %c8_26 = arith.constant 8 : index
    %c256_27 = arith.constant 256 : index
    %21 = vector.load %arg4[%c8_26, %c256_27] : memref<72x512xf32, #tpu.memory_space<vmem>>, vector<8x256xf32>
    tpu.vector_store %arg4[%c8_26, %c256_27], %20 {strides = array<i32>} : memref<72x512xf32, #tpu.memory_space<vmem>>, vector<8x256xf32>,
    %c8_28 = arith.constant 8 : index
    %c2_29 = arith.constant 2 : index
    %22 = vector.load %arg1[%c8_28, %c2_29] : memref<16x384xf32, #tpu.memory_space<vmem>>, vector<8x256xf32>
    %c16_30 = arith.constant 16 : index
    %c256_31 = arith.constant 256 : index
    %23 = vector.load %arg4[%c16_30, %c256_31] : memref<72x512xf32, #tpu.memory_space<vmem>>, vector<8x256xf32>
    tpu.vector_store %arg4[%c16_30, %c256_31], %22 {strides = array<i32>} : memref<72x512xf32, #tpu.memory_space<vmem>>, vector<8x256xf32>,
    %c8_32 = arith.constant 8 : index
    %c16_33 = arith.constant 16 : index
    %24 = vector.load %arg1[%c8_32, %c16_33] : memref<16x384xf32, #tpu.memory_space<vmem>>, vector<8x256xf32>
    %c24_34 = arith.constant 24 : index
    %c256_35 = arith.constant 256 : index
    %25 = vector.load %arg4[%c24_34, %c256_35] : memref<72x512xf32, #tpu.memory_space<vmem>>, vector<8x256xf32>
    tpu.vector_store %arg4[%c24_34, %c256_35], %24 {strides = array<i32>} : memref<72x512xf32, #tpu.memory_space<vmem>>, vector<8x256xf32>,
    %c8_36 = arith.constant 8 : index
    %c17_37 = arith.constant 17 : index
    %26 = vector.load %arg1[%c8_36, %c17_37] : memref<16x384xf32, #tpu.memory_space<vmem>>, vector<8x256xf32>
    %c32_38 = arith.constant 32 : index
    %c256_39 = arith.constant 256 : index
    %27 = vector.load %arg4[%c32_38, %c256_39] : memref<72x512xf32, #tpu.memory_space<vmem>>, vector<8x256xf32>
    tpu.vector_store %arg4[%c32_38, %c256_39], %26 {strides = array<i32>} : memref<72x512xf32, #tpu.memory_space<vmem>>, vector<8x256xf32>,
    %c8_40 = arith.constant 8 : index
    %c18_41 = arith.constant 18 : index
    %28 = vector.load %arg1[%c8_40, %c18_41] : memref<16x384xf32, #tpu.memory_space<vmem>>, vector<8x256xf32>
    %c40_42 = arith.constant 40 : index
    %c256_43 = arith.constant 256 : index
    %29 = vector.load %arg4[%c40_42, %c256_43] : memref<72x512xf32, #tpu.memory_space<vmem>>, vector<8x256xf32>
    tpu.vector_store %arg4[%c40_42, %c256_43], %28 {strides = array<i32>} : memref<72x512xf32, #tpu.memory_space<vmem>>, vector<8x256xf32>,
    %c8_44 = arith.constant 8 : index
    %c32_45 = arith.constant 32 : index
    %30 = vector.load %arg1[%c8_44, %c32_45] : memref<16x384xf32, #tpu.memory_space<vmem>>, vector<8x256xf32>
    %c48_46 = arith.constant 48 : index
    %c256_47 = arith.constant 256 : index
    %31 = vector.load %arg4[%c48_46, %c256_47] : memref<72x512xf32, #tpu.memory_space<vmem>>, vector<8x256xf32>
    tpu.vector_store %arg4[%c48_46, %c256_47], %30 {strides = array<i32>} : memref<72x512xf32, #tpu.memory_space<vmem>>, vector<8x256xf32>,
    %c8_48 = arith.constant 8 : index
    %c33_49 = arith.constant 33 : index
    %32 = vector.load %arg1[%c8_48, %c33_49] : memref<16x384xf32, #tpu.memory_space<vmem>>, vector<8x256xf32>
    %c56_50 = arith.constant 56 : index
    %c256_51 = arith.constant 256 : index
    %33 = vector.load %arg4[%c56_50, %c256_51] : memref<72x512xf32, #tpu.memory_space<vmem>>, vector<8x256xf32>
    tpu.vector_store %arg4[%c56_50, %c256_51], %32 {strides = array<i32>} : memref<72x512xf32, #tpu.memory_space<vmem>>, vector<8x256xf32>,
    %c8_52 = arith.constant 8 : index
    %c34_53 = arith.constant 34 : index
    %34 = vector.load %arg1[%c8_52, %c34_53] : memref<16x384xf32, #tpu.memory_space<vmem>>, vector<8x256xf32>
    %c64_54 = arith.constant 64 : index
    %c256_55 = arith.constant 256 : index
    %35 = vector.load %arg4[%c64_54, %c256_55] : memref<72x512xf32, #tpu.memory_space<vmem>>, vector<8x256xf32>
    tpu.vector_store %arg4[%c64_54, %c256_55], %34 {strides = array<i32>} : memref<72x512xf32, #tpu.memory_space<vmem>>, vector<8x256xf32>,
    %c0_56 = arith.constant 0 : index
    %c0_57 = arith.constant 0 : index
    %36 = vector.load %arg2[%c0_56, %c0_57] : memref<3x72xf32, #tpu.memory_space<vmem>>, vector<3x72xf32>
    %c0_58 = arith.constant 0 : index
    %c0_59 = arith.constant 0 : index
    %37 = vector.load %arg4[%c0_58, %c0_59] : memref<72x512xf32, #tpu.memory_space<vmem>>, vector<72x512xf32>
    %cst = arith.constant dense<0.000000e+00> : vector<3x512xf32>
    %38 = tpu.matmul %36, %37, %cst {dimension_numbers = #tpu.dot_dimension_numbers<[1], [0], [0], [1], [0, 0, 1, 1], [], []>} : vector<3x72xf32>, vector<72x512xf32>, vector<3x512xf32> -> vector<3x512xf32>
    %c0_60 = arith.constant 0 : index
    %c0_61 = arith.constant 0 : index
    %39 = vector.load %arg3[%c0_60, %c0_61] : memref<3x512xf32, #tpu.memory_space<vmem>>, vector<3x512xf32>
    tpu.vector_store %arg3[%c0_60, %c0_61], %38 {strides = array<i32>} : memref<3x512xf32, #tpu.memory_space<vmem>>, vector<3x512xf32>,
    return
  }
  func.func @transform_0(%arg0: i32) -> (i32, i32) {
    %c0_i32 = arith.constant 0 : i32
    %c0_i32_0 = arith.constant 0 : i32
    return %arg0, %c0_i32 : i32, i32
  }
  func.func @transform_1(%arg0: i32) -> (i32, i32) {
    %c0_i32 = arith.constant 0 : i32
    %c0_i32_0 = arith.constant 0 : i32
    %c0_i32_1 = arith.constant 0 : i32
    return %c0_i32, %c0_i32_0 : i32, i32
  }
  func.func @transform_2(%arg0: i32) -> (i32, i32) {
    %c0_i32 = arith.constant 0 : i32
    %c0_i32_0 = arith.constant 0 : i32
    return %c0_i32, %arg0 : i32, i32
  }
}

</mosaic_0001>

<bundles_post_ra>
// kernel: tpu_custom_call.1
= control target key start
LH: loop header
LB: loop body
LE: loop exit
PB: predicated region body
PF: predicated region fallthrough
CT: control target
= control target key end

     0   :  { %7 = vsyncpa [#allocation4], 0  ;;  %s715_s0 = inlined_call_operand.hbm [shape: f32[16,384], index: 0, kind: input, shape index: {}]   ;;  %s716_s1 = inlined_call_operand.hbm [shape: f32[3,72], index: 1, kind: input, shape index: {}]   ;;  %s717_s2 = inlined_call_operand.hbm [shape: f32[3,512], index: 2, kind: output, shape index: {}]  }
   0x1   :  { %8 = vsyncpa [#allocation7], 0 }
   0x2   :  { %9 = vsyncpa [#allocation5], 0  ;;  %s633_s9 = smov [#allocation3]  }
   0x3   :  { %s15_s10 = sshll.u32 %s633_s9, 4  ;;  %s16_s10 = int_to_ptr.vmem [resolvable:$true] %s15_s10 }
   0x4   :  { %s575_s11 = scalar_lea.vmem %s16_s10, 768  ;;  %p580_p1 = scmp.lt.s32.totalorder %s16_s10, %s16_s10 }
   0x5   :  { %p576_p0 = scmp.ne.s32.totalorder %s16_s10, %s575_s11  ;;  %p581_p2 = scmp.lt.s32.totalorder %s575_s11, %s575_s11 }
   0x7   :  { %p582_p3 = por %p581_p2, %p580_p1 }
   0x9   :  { %p583_p4 = pnand %p582_p3, %p576_p0 }
   0xb   :  { %586 = shalt.err (!%p583_p4)
}
   0xc   :  { %s634_s12 = smov 384   ;;  %s635_s13 = smov 24  }
   0xd   :  { %21 = dma.hbm_to_vmem [thread:$0]  %s715_s0, 768, %s16_s10, [#allocation4], %s634_s12, %s634_s12, %s635_s13  }
   0xe   :  { %s636_s16 = smov [#allocation6]  }
   0xf   :  { %s28_s17 = sshll.u32 %s636_s16, 4  ;;  %s29_s17 = int_to_ptr.vmem [resolvable:$true] %s28_s17 }
  0x10   :  { %s595_s18 = scalar_lea.vmem %s29_s17, 64  ;;  %p600_p6 = scmp.lt.s32.totalorder %s29_s17, %s29_s17 }
  0x11   :  { %p596_p5 = scmp.ne.s32.totalorder %s29_s17, %s595_s18  ;;  %p601_p7 = scmp.lt.s32.totalorder %s595_s18, %s595_s18 }
  0x13   :  { %p602_p8 = por %p601_p7, %p600_p6 }
  0x15   :  { %p603_p9 = pnand %p602_p8, %p596_p5 }
  0x17   :  { %606 = shalt.err (!%p603_p9)
}
  0x18   :  { %31 = dma.hbm_to_vmem [thread:$0]  %s716_s1, 64, %s29_s17, [#allocation7]  }
  0x19   :  { %627 = dma.done.wait [#allocation4], 768  }
  0x1a   :  { %628 = vsyncadd [#allocation4], 4294966528 }
  0x1b   :  { %629 = dma.done.wait [#allocation7], 64  }
  0x1c   :  { %630 = vsyncadd [#allocation7], 4294967232  ;;  %v668_v0 = vld [vmem:[#allocation3 + $0x20] sm:$0xff]  ;;  %v670_v1 = vld [vmem:[#allocation3 + $0x8] sm:$0xff]  ;;  %s637_s0 = smov 94   ;;  %s638_s1 = smov 95  }
  0x1d   :  { %332 = vrot.lane.b32.xlu1 %v668_v0, %s637_s0  ;;  %183 = vrot.lane.b32.xlu0 %v670_v1, %s637_s0  ;;  %v326_v2 = vld [vmem:[#allocation3 + $0x28] sm:$0xff]  ;;  %v177_v3 = vld [vmem:[#allocation3 + $0x10] sm:$0xff]  ;;  %v674_v4 = vld [vmem:[#allocation3 + $0x18] sm:$0xff]  ;;  %s639_s21 = smov 96   ;;  %s640_s22 = smov 110   ;;  %v644_v6 = vmov 0.0  }
  0x1e   :  { %v676_v5 = vld [vmem:[#allocation3] sm:$0xff]  ;;  %s641_s23 = smov 111   ;;  %s642_s24 = smov 112   ;;  %447 = vmatprep.mubr.f32.mxu0 %v644_v6  ;;  %518 = vmatprep.mubr.f32.mxu1 %v644_v6  ;;  %vm187_vm0 = vcmask 769024   ;;  %vm168_vm1 = vcmask 777216   ;;  %vm149_vm2 = vcmask 785408  }
  0x1f   :  { %s643_s25 = smov 126   ;;  %s645_s26 = smov 127   ;;  %vm130_vm3 = vcmask 900096   ;;  %vm111_vm4 = vcmask 908288   ;;  %vm92_vm5 = vcmask 916480   ;;  %vm73_vm6 = vcmask 1031168  }
  0x20   :  { %vm54_vm7 = vcmask 1039360   ;;  %vm379_vm8 = vcmask 588800   ;;  %s646_s27 = smov [#allocation8]  }
  0x21   :  { %334 = vrot.lane.b32.xlu1 %v326_v2, %s637_s0  ;;  %185 = vrot.lane.b32.xlu0 %v177_v3, %s637_s0  ;;  %s541_s28 = sshll.u32 %s646_s27, 4  ;;  %s542_s28 = int_to_ptr.vmem [resolvable:$true] %s541_s28 }
  0x22   :  { %s607_s29 = scalar_lea.vmem %s542_s28, 256  ;;  %p612_p11 = scmp.lt.s32.totalorder %s542_s28, %s542_s28 }
  0x23   :  { %p608_p10 = scmp.ne.s32.totalorder %s542_s28, %s607_s29  ;;  %p613_p12 = scmp.lt.s32.totalorder %s607_s29, %s607_s29 }
  0x25   :  { %330 = vrot.lane.b32.xlu1 %v674_v4, %s637_s0  ;;  %181 = vrot.lane.b32.xlu0 %v676_v5, %s637_s0  ;;  %p614_p13 = por %p613_p12, %p612_p11 }
  0x27   :  { %p615_p0 = pnand %p614_p13, %p608_p10 }
  0x29   :  { %166 = vrot.lane.b32.xlu1 %v177_v3, %s638_s1  ;;  %164 = vrot.lane.b32.xlu0 %v670_v1, %s638_s1 }
  0x2d   :  { %316 = vrot.lane.b32.xlu1 %v326_v2, %s638_s1  ;;  %314 = vrot.lane.b32.xlu0 %v668_v0, %s638_s1 }
  0x31   :  { %312 = vrot.lane.b32.xlu1 %v674_v4, %s638_s1  ;;  %162 = vrot.lane.b32.xlu0 %v676_v5, %s638_s1 }
  0x35   :  { %147 = vrot.lane.b32.xlu1 %v177_v3, %s639_s21  ;;  %145 = vrot.lane.b32.xlu0 %v670_v1, %s639_s21 }
  0x39   :  { %298 = vrot.lane.b32.xlu1 %v326_v2, %s639_s21  ;;  %296 = vrot.lane.b32.xlu0 %v668_v0, %s639_s21 }
  0x3d   :  { %294 = vrot.lane.b32.xlu1 %v674_v4, %s639_s21  ;;  %143 = vrot.lane.b32.xlu0 %v676_v5, %s639_s21 }
  0x41   :  { %128 = vrot.lane.b32.xlu1 %v177_v3, %s640_s22  ;;  %126 = vrot.lane.b32.xlu0 %v670_v1, %s640_s22 }
  0x45   :  { %280 = vrot.lane.b32.xlu1 %v326_v2, %s640_s22  ;;  %278 = vrot.lane.b32.xlu0 %v668_v0, %s640_s22 }
  0x49   :  { %276 = vrot.lane.b32.xlu1 %v674_v4, %s640_s22  ;;  %124 = vrot.lane.b32.xlu0 %v676_v5, %s640_s22 }
  0x4d   :  { %109 = vrot.lane.b32.xlu1 %v177_v3, %s641_s23  ;;  %107 = vrot.lane.b32.xlu0 %v670_v1, %s641_s23 }
  0x51   :  { %262 = vrot.lane.b32.xlu1 %v326_v2, %s641_s23  ;;  %260 = vrot.lane.b32.xlu0 %v668_v0, %s641_s23 }
  0x55   :  { %258 = vrot.lane.b32.xlu1 %v674_v4, %s641_s23  ;;  %105 = vrot.lane.b32.xlu0 %v676_v5, %s641_s23 }
  0x59   :  { %90 = vrot.lane.b32.xlu1 %v177_v3, %s642_s24  ;;  %88 = vrot.lane.b32.xlu0 %v670_v1, %s642_s24 }
  0x5d   :  { %244 = vrot.lane.b32.xlu1 %v326_v2, %s642_s24  ;;  %242 = vrot.lane.b32.xlu0 %v668_v0, %s642_s24 }
  0x61   :  { %240 = vrot.lane.b32.xlu1 %v674_v4, %s642_s24  ;;  %86 = vrot.lane.b32.xlu0 %v676_v5, %s642_s24 }
  0x65   :  { %71 = vrot.lane.b32.xlu1 %v177_v3, %s643_s25  ;;  %69 = vrot.lane.b32.xlu0 %v670_v1, %s643_s25 }
  0x69   :  { %226 = vrot.lane.b32.xlu1 %v326_v2, %s643_s25  ;;  %224 = vrot.lane.b32.xlu0 %v668_v0, %s643_s25 }
  0x6d   :  { %222 = vrot.lane.b32.xlu1 %v674_v4, %s643_s25  ;;  %67 = vrot.lane.b32.xlu0 %v676_v5, %s643_s25 }
  0x71   :  { %52 = vrot.lane.b32.xlu1 %v177_v3, %s645_s26  ;;  %50 = vrot.lane.b32.xlu0 %v670_v1, %s645_s26 }
  0x75   :  { %208 = vrot.lane.b32.xlu1 %v326_v2, %s645_s26  ;;  %206 = vrot.lane.b32.xlu0 %v668_v0, %s645_s26 }
  0x79   :  { %204 = vrot.lane.b32.xlu1 %v674_v4, %s645_s26  ;;  %48 = vrot.lane.b32.xlu0 %v676_v5, %s645_s26 }
  0x8f   :  { %v333_v7 = vpop.permute.xlu1 %332  ;;  %v184_v8 = vpop.permute.xlu0 %183 }
  0x93   :  { %v335_v9 = vpop.permute.xlu1 %334  ;;  %v186_v10 = vpop.permute.xlu0 %185 }
  0x94   :  { %v189_v11 = vsel %vm187_vm0, %v184_v8, %v186_v10  ;;  %v337_v12 = vsel %vm187_vm0, %v333_v7, %v335_v9 }
  0x95   :  { %397 = vmatprep.subr.mxu0 %v189_v11  ;;  %468 = vmatprep.subr.mxu1 %v337_v12 }
  0x97   :  { %v331_v13 = vpop.permute.xlu1 %330  ;;  %v182_v14 = vpop.permute.xlu0 %181 }
  0x98   :  { %v188_v15 = vsel %vm187_vm0, %v182_v14, %v184_v8  ;;  %v336_v16 = vsel %vm187_vm0, %v331_v13, %v333_v7 }
  0x99   :  { %398 = vmatpush1.msra.mxu0 %v188_v15  ;;  %469 = vmatpush1.msra.mxu1 %v336_v16 }
  0x9b   :  { %v167_v17 = vpop.permute.xlu1 %166  ;;  %v165_v18 = vpop.permute.xlu0 %164 }
  0x9c   :  { %v170_v19 = vsel %vm168_vm1, %v165_v18, %v167_v17 }
  0x9d   :  { %399 = vmatprep.subr.mxu0 %v170_v19 }
  0x9f   :  { %v317_v20 = vpop.permute.xlu1 %316  ;;  %v315_v21 = vpop.permute.xlu0 %314 }
  0xa0   :  { %v319_v22 = vsel %vm168_vm1, %v315_v21, %v317_v20 }
  0xa1   :  { %470 = vmatprep.subr.mxu1 %v319_v22 }
  0xa3   :  { %v313_v23 = vpop.permute.xlu1 %312  ;;  %v163_v24 = vpop.permute.xlu0 %162 }
  0xa4   :  { %v169_v25 = vsel %vm168_vm1, %v163_v24, %v165_v18  ;;  %v318_v26 = vsel %vm168_vm1, %v313_v23, %v315_v21 }
  0xa5   :  { %400 = vmatpush1.msra.mxu0 %v169_v25  ;;  %471 = vmatpush1.msra.mxu1 %v318_v26 }
  0xa7   :  { %v148_v27 = vpop.permute.xlu1 %147  ;;  %v146_v28 = vpop.permute.xlu0 %145 }
  0xa8   :  { %v151_v29 = vsel %vm149_vm2, %v146_v28, %v148_v27  ;;  %v342_v27 = vld [vmem:[#allocation6] sm:$0x7] }
  0xa9   :  { %401 = vmatprep.subr.mxu0 %v151_v29 }
  0xab   :  { %v299_v30 = vpop.permute.xlu1 %298  ;;  %v297_v31 = vpop.permute.xlu0 %296 }
  0xac   :  { %v301_v32 = vsel %vm149_vm2, %v297_v31, %v299_v30 }
  0xad   :  { %472 = vmatprep.subr.mxu1 %v301_v32 }
  0xaf   :  { %v295_v33 = vpop.permute.xlu1 %294  ;;  %v144_v34 = vpop.permute.xlu0 %143 }
  0xb0   :  { %v150_v35 = vsel %vm149_vm2, %v144_v34, %v146_v28  ;;  %v300_v36 = vsel %vm149_vm2, %v295_v33, %v297_v31 }
  0xb1   :  { %402 = vmatpush1.msra.mxu0 %v150_v35  ;;  %473 = vmatpush1.msra.mxu1 %v300_v36 }
  0xb3   :  { %v129_v37 = vpop.permute.xlu1 %128  ;;  %v127_v38 = vpop.permute.xlu0 %126 }
  0xb4   :  { %v132_v39 = vsel %vm130_vm3, %v127_v38, %v129_v37 }
  0xb5   :  { %403 = vmatprep.subr.mxu0 %v132_v39 }
  0xb7   :  { %v281_v40 = vpop.permute.xlu1 %280  ;;  %v279_v41 = vpop.permute.xlu0 %278 }
  0xb8   :  { %v283_v42 = vsel %vm130_vm3, %v279_v41, %v281_v40 }
  0xb9   :  { %474 = vmatprep.subr.mxu1 %v283_v42 }
  0xbb   :  { %v277_v43 = vpop.permute.xlu1 %276  ;;  %v125_v44 = vpop.permute.xlu0 %124 }
  0xbc   :  { %v131_v45 = vsel %vm130_vm3, %v125_v44, %v127_v38  ;;  %v282_v46 = vsel %vm130_vm3, %v277_v43, %v279_v41 }
  0xbd   :  { %404 = vmatpush1.msra.mxu0 %v131_v45  ;;  %475 = vmatpush1.msra.mxu1 %v282_v46 }
  0xbf   :  { %v110_v47 = vpop.permute.xlu1 %109  ;;  %v108_v48 = vpop.permute.xlu0 %107 }
  0xc0   :  { %v113_v49 = vsel %vm111_vm4, %v108_v48, %v110_v47 }
  0xc1   :  { %405 = vmatprep.subr.mxu0 %v113_v49 }
  0xc3   :  { %v263_v50 = vpop.permute.xlu1 %262  ;;  %v261_v51 = vpop.permute.xlu0 %260 }
  0xc4   :  { %v265_v52 = vsel %vm111_vm4, %v261_v51, %v263_v50 }
  0xc5   :  { %476 = vmatprep.subr.mxu1 %v265_v52 }
  0xc7   :  { %v259_v53 = vpop.permute.xlu1 %258  ;;  %v106_v54 = vpop.permute.xlu0 %105 }
  0xc8   :  { %v112_v55 = vsel %vm111_vm4, %v106_v54, %v108_v48  ;;  %v264_v56 = vsel %vm111_vm4, %v259_v53, %v261_v51 }
  0xc9   :  { %406 = vmatpush1.msra.mxu0 %v112_v55  ;;  %477 = vmatpush1.msra.mxu1 %v264_v56 }
  0xcb   :  { %v91_v57 = vpop.permute.xlu1 %90  ;;  %v89_v58 = vpop.permute.xlu0 %88 }
  0xcc   :  { %v94_v59 = vsel %vm92_vm5, %v89_v58, %v91_v57 }
  0xcd   :  { %407 = vmatprep.subr.mxu0 %v94_v59 }
  0xcf   :  { %v245_v60 = vpop.permute.xlu1 %244  ;;  %v243_v61 = vpop.permute.xlu0 %242 }
  0xd0   :  { %v247_v62 = vsel %vm92_vm5, %v243_v61, %v245_v60 }
  0xd1   :  { %478 = vmatprep.subr.mxu1 %v247_v62 }
  0xd3   :  { %v241_v63 = vpop.permute.xlu1 %240  ;;  %v87_v2 = vpop.permute.xlu0 %86 }
  0xd4   :  { %v93_v3 = vsel %vm92_vm5, %v87_v2, %v89_v58  ;;  %v246_v6 = vsel %vm92_vm5, %v241_v63, %v243_v61 }
  0xd5   :  { %408 = vmatpush1.msra.mxu0 %v93_v3  ;;  %479 = vmatpush1.msra.mxu1 %v246_v6 }
  0xd7   :  { %v72_v7 = vpop.permute.xlu1 %71  ;;  %v70_v8 = vpop.permute.xlu0 %69 }
  0xd8   :  { %v75_v9 = vsel %vm73_vm6, %v70_v8, %v72_v7 }
  0xd9   :  { %409 = vmatprep.subr.mxu0 %v75_v9 }
  0xdb   :  { %v227_v10 = vpop.permute.xlu1 %226  ;;  %v225_v11 = vpop.permute.xlu0 %224 }
  0xdc   :  { %v229_v12 = vsel %vm73_vm6, %v225_v11, %v227_v10 }
  0xdd   :  { %480 = vmatprep.subr.mxu1 %v229_v12 }
  0xdf   :  { %v223_v13 = vpop.permute.xlu1 %222  ;;  %v68_v14 = vpop.permute.xlu0 %67 }
  0xe0   :  { %v74_v15 = vsel %vm73_vm6, %v68_v14, %v70_v8  ;;  %v228_v16 = vsel %vm73_vm6, %v223_v13, %v225_v11 }
  0xe1   :  { %410 = vmatpush1.msra.mxu0 %v74_v15  ;;  %481 = vmatpush1.msra.mxu1 %v228_v16 }
  0xe3   :  { %v53_v17 = vpop.permute.xlu1 %52  ;;  %v51_v18 = vpop.permute.xlu0 %50 }
  0xe4   :  { %v56_v19 = vsel %vm54_vm7, %v51_v18, %v53_v17 }
  0xe5   :  { %411 = vmatprep.subr.mxu0 %v56_v19 }
  0xe7   :  { %v209_v20 = vpop.permute.xlu1 %208  ;;  %v207_v21 = vpop.permute.xlu0 %206 }
  0xe8   :  { %v211_v22 = vsel %vm54_vm7, %v207_v21, %v209_v20 }
  0xe9   :  { %482 = vmatprep.subr.mxu1 %v211_v22 }
  0xeb   :  { %v205_v23 = vpop.permute.xlu1 %204  ;;  %v49_v24 = vpop.permute.xlu0 %48 }
  0xec   :  { %v55_v25 = vsel %vm54_vm7, %v49_v24, %v51_v18  ;;  %v210_v26 = vsel %vm54_vm7, %v205_v23, %v207_v21 }
  0xed   :  { %412 = vmatpush1.msra.mxu0 %v55_v25  ;;  %483 = vmatpush1.msra.mxu1 %v210_v26 }
  0xee   :  { %413 = vmatprep.subr.mxu0 %v670_v1  ;;  %484 = vmatprep.subr.mxu1 %v668_v0 }
  0xef   :  { %414 = vmatpush1.msra.mxu0 %v676_v5  ;;  %485 = vmatpush1.msra.mxu1 %v674_v4 }
  0xf0   :  { %551 = vmatmul.mubr.msk.f32.vlgmr.msra.gmra.mxu0 %vm379_vm8, %v342_v27  ;;  %552 = vmatmul.mubr.msk.f32.vlgmr.msra.gmra.mxu1 %vm379_vm8, %v342_v27 }
 0x1b0   :  { %v449_v28 = vpop.f32.mrf.mxu0  ;;  %v520_v29 = vpop.f32.mrf.mxu1 }
 0x1b2   :  { %v451_v30 = vpop.f32.mrf.mxu0  ;;  %v522_v31 = vpop.f32.mrf.mxu1 }
 0x1b3   :  { %v529_v32 = vcombine.low %v449_v28, %v451_v30  ;;  %v530_v33 = vcombine.low %v520_v29, %v522_v31 }
 0x1b5   :  { %533 = vst [vmem:[#allocation8] sm:$0x77] %v529_v32  ;;  %534 = vst [vmem:[#allocation8 + $0x8] sm:$0x77] %v530_v33 }
 0x1b6   :  { %618 = shalt.err (!%p615_p0)
}
 0x1b7   :  { %544 = dma.vmem_to_hbm [thread:$0]  %s542_s28, 256, %s717_s2, [#allocation5]  }
 0x1b8   :  { %631 = dma.done.wait [#allocation5], 256  }
 0x1b9   :  { %632 = vsyncadd [#allocation5], 4294967040 }
 0x1ba   :  { %548 = vsyncpa [#allocation4], 1 }
 0x1bb   :  { %549 = vsyncpa [#allocation7], 1 }
 0x1bc   :  { %550 = vsyncpa [#allocation5], 1 }

</bundles_post_ra>
